<compile_context>
chip_gen: v5e
topology: v5e:2x2
jax: 0.10.0
libtpu: 0.0.40
codegen_flags: <defaults>
</compile_context>

<pallas_src>
import numpy as np
import jax
import jax.numpy as jnp
from jax.experimental import pallas as pl
from jax.experimental.pallas import tpu as pltpu


# --------------------------------------------------------------------------- #
# in-kernel helpers (traced 2-D values; all shapes static)
# --------------------------------------------------------------------------- #
def _shift_prev(a, level, tb):
    """Rows of `a` are in level-`level` parity order over positions m.
    Return an array whose row r holds a's value at position m(r)-1 (0 if <0)."""
    rows, cols = a.shape
    if level == 0:
        if rows == tb:                       # L0 == 1
            return jnp.zeros_like(a)
        return jnp.concatenate(
            [jnp.zeros((tb, cols), a.dtype), a[: rows - tb, :]], axis=0)
    half = rows // 2
    even, odd = a[:half, :], a[half:, :]
    return jnp.concatenate([_shift_prev(odd, level - 1, tb), even], axis=0)


def _shift_next(a, level, tb):
    """Same as _shift_prev but for position m(r)+1 (0 if out of range)."""
    rows, cols = a.shape
    if level == 0:
        if rows == tb:
            return jnp.zeros_like(a)
        return jnp.concatenate(
            [a[tb:, :], jnp.zeros((tb, cols), a.dtype)], axis=0)
    half = rows // 2
    even, odd = a[:half, :], a[half:, :]
    return jnp.concatenate([odd, _shift_next(even, level - 1, tb)], axis=0)


def _deconv_taps(x, w_ref, b_ref, level, tb, c_out):
    """One ConvTranspose1d(stride=2, k=4, pad=1) as a single MXU matmul
    against the 4 taps concatenated along columns, + banded row shifts."""
    xb = x.astype(jnp.bfloat16)                          # bf16 MXU inputs
    p = jnp.dot(xb, w_ref[...], preferred_element_type=jnp.float32)
    p0 = p[:, 0 * c_out:1 * c_out]
    p1 = p[:, 1 * c_out:2 * c_out]
    p2 = p[:, 2 * c_out:3 * c_out]
    p3 = p[:, 3 * c_out:4 * c_out]
    y_even = p1 + _shift_prev(p3, level, tb)             # output positions 2m
    y_odd = p2 + _shift_next(p0, level, tb)              # output positions 2m+1
    y = jnp.concatenate([y_even, y_odd], axis=0) + b_ref[...]
    return y, p3                                          # p3 reused for output_padding tail


def _make_kernel(tb, l0, c1, c2, c3p):
    def kernel(z_ref, wfc1_ref, bfc1_ref, wfc2_ref, bfc2_ref,
               w1_ref, b1_ref, w2_ref, b2_ref, w3_ref, b3_ref, out_ref):
        # fc1 + relu (bf16 weights, f32 accumulation)
        h = jnp.dot(z_ref[...].astype(jnp.bfloat16), wfc1_ref[...],
                    preferred_element_type=jnp.float32)
        h = jnp.maximum(h + bfc1_ref[...], 0.0)
        # fc2 + relu (columns permuted in glue to position-major (j, c) order)
        h = jnp.dot(h.astype(jnp.bfloat16), wfc2_ref[...],
                    preferred_element_type=jnp.float32)
        h = jnp.maximum(h + bfc2_ref[...], 0.0)            # (tb, l0*64)
        # row expansion: (tb, l0*64) -> (l0*tb, 64), rows ordered (j, b)
        x = jnp.concatenate([h[:, j * 64:(j + 1) * 64] for j in range(l0)],
                            axis=0)
        # deconv1 + relu   (level-0 parity order)
        y, _ = _deconv_taps(x, w1_ref, b1_ref, 0, tb, c1)
        x = jnp.maximum(y, 0.0)
        # deconv2 + relu   (level-1)
        y, _ = _deconv_taps(x, w2_ref, b2_ref, 1, tb, c2)
        x = jnp.maximum(y, 0.0)
        # deconv3 (level-2) + output_padding=1 tail + sigmoid
        y, p3 = _deconv_taps(x, w3_ref, b3_ref, 2, tb, c3p)
        tail = p3[-tb:, :] + b3_ref[...]                   # position t = L_out-1
        y = jnp.concatenate([y, tail], axis=0)             # ((8*l0+1)*tb, c3p)
        # sigmoid via EUP exp + approximate reciprocal (small ~1e-3 bias, OK
        # for this tolerance; switch approx=False if bit-accuracy matters)
        s = pl.reciprocal(1.0 + jnp.exp(-y), approx=True)
        out_ref[0, :, :] = s                                # one contiguous slab
    return kernel


# --------------------------------------------------------------------------- #
# glue: parameter preparation
# --------------------------------------------------------------------------- #
def make_params(key, latent_size, hidden_size, output_channels, output_length):
    assert output_length % 8 == 0 and output_length >= 8
    L0 = output_length // 8
    keys = jax.random.split(key, 10)

    def uniform(k, shape, fan_in):
        bound = 1.0 / np.sqrt(fan_in)
        return jax.random.uniform(k, shape, jnp.float32, -bound, bound)

    # nn.Linear weights (out, in)
    Wfc1 = uniform(keys[0], (hidden_size, latent_size), latent_size)
    bfc1 = uniform(keys[1], (hidden_size,), latent_size)
    Wfc2 = uniform(keys[2], (64 * L0, hidden_size), hidden_size)
    bfc2 = uniform(keys[3], (64 * L0,), hidden_size)
    # ConvTranspose1d weights: (in_channels, out_channels, kernel_size)
    W1 = uniform(keys[4], (64, 32, 4), 64 * 4)
    b1 = uniform(keys[5], (32,), 64 * 4)
    W2 = uniform(keys[6], (32, 16, 4), 32 * 4)
    b2 = uniform(keys[7], (16,), 32 * 4)
    W3 = uniform(keys[8], (16, output_channels, 4), 16 * 4)
    b3 = uniform(keys[9], (output_channels,), 16 * 4)

    # fc1: (in, out), bf16
    wfc1 = jnp.asarray(np.asarray(Wfc1).T, jnp.bfloat16)
    bfc1_k = jnp.asarray(np.asarray(bfc1).reshape(1, -1))

    # fc2: permute output features from torch order (c*L0 + j) to position-major
    # (j*64 + c), then transpose to (in, out), bf16.
    Wfc2_np = np.asarray(Wfc2)                                    # (64*L0, hidden)
    Wfc2_perm = (Wfc2_np.reshape(64, L0, hidden_size)
                 .transpose(1, 0, 2).reshape(L0 * 64, hidden_size))
    wfc2 = jnp.asarray(Wfc2_perm.T, jnp.bfloat16)                 # (hidden, L0*64)
    bfc2_perm = np.asarray(bfc2).reshape(64, L0).T.reshape(1, L0 * 64)
    bfc2_k = jnp.asarray(bfc2_perm)

    # deconv per-tap weights: concat taps along columns; last layer padded only
    # to a multiple of 8 output channels (minimal padding).  Stored as bf16.
    def taps(W, pad_to=None):
        W = np.asarray(W, np.float32)                             # (C_in, C_out, K)
        C_in, C_out, K = W.shape
        cp = C_out if pad_to is None else pad_to
        M = np.zeros((C_in, K * cp), np.float32)
        for k in range(K):
            M[:, k * cp:k * cp + C_out] = W[:, :, k]
        return jnp.asarray(M, jnp.bfloat16)

    Cp = ((output_channels + 7) // 8) * 8
    w1t = taps(W1)                                                # (64, 128)
    w2t = taps(W2)                                                # (32, 64)
    w3t = taps(W3, pad_to=Cp)                                     # (16, 4*Cp)
    b1k = jnp.asarray(np.asarray(b1, np.float32).reshape(1, -1))
    b2k = jnp.asarray(np.asarray(b2, np.float32).reshape(1, -1))
    b3pad = np.zeros((1, Cp), np.float32)
    b3pad[0, :output_channels] = np.asarray(b3)
    b3k = jnp.asarray(b3pad)

    # inverse permutation: output row-group g -> time position t
    G = 8 * L0 + 1
    perm = np.empty((G,), np.int64)
    for g in range(G):
        if g == 8 * L0:
            perm[g] = 8 * L0
        else:
            p3, g2 = divmod(g, 4 * L0)
            p2, g1 = divmod(g2, 2 * L0)
            p1, j = divmod(g1, L0)
            perm[g] = 8 * j + 4 * p1 + 2 * p2 + p3
    inv_perm = np.argsort(perm).astype(np.int32)

    params = dict(wfc1=wfc1, bfc1=bfc1_k, wfc2=wfc2, bfc2=bfc2_k,
                  w1=w1t, b1=b1k, w2=w2t, b2=b2k, w3=w3t, b3=b3k)
    raw = dict(Wfc1=Wfc1, bfc1=bfc1, Wfc2=Wfc2, bfc2=bfc2,
               W1=W1, b1=b1, W2=W2, b2=b2, W3=W3, b3=b3)
    meta = dict(L0=L0, L3=8 * L0 + 1, G=G, C_out=output_channels, Cp=Cp,
                inv_perm=inv_perm)
    return params, raw, meta


# --------------------------------------------------------------------------- #
# batch-tile selection (perf feedback #1 / #5)
# --------------------------------------------------------------------------- #
def _choose_tb(B, L0, target_rows=256, max_tb=512):
    """Multiple of 8, large enough that TB*L0 >= target MXU rows when the
    batch allows, but keep >= 2 grid steps so both v7x TensorCores get work."""
    Bp8 = ((B + 7) // 8) * 8
    want = -(-target_rows // L0)                 # ceil(target_rows / L0)
    want = ((want + 7) // 8) * 8
    tb = max(8, min(max_tb, want))
    tb = min(tb, Bp8)
    if Bp8 >= 16 and tb > Bp8 // 2:
        tb = max(8, ((Bp8 // 2) // 8) * 8)
    return tb


# --------------------------------------------------------------------------- #
# glue: forward
# --------------------------------------------------------------------------- #
def decoder_forward(z, params, meta):
    B, latent = z.shape
    hidden = params["wfc1"].shape[1]
    L0, Cp, G = meta["L0"], meta["Cp"], meta["G"]

    TB = _choose_tb(B, L0)
    Bp = ((B + TB - 1) // TB) * TB
    if Bp != B:
        z = jnp.concatenate([z, jnp.zeros((Bp - B, latent), z.dtype)], axis=0)
    nb = Bp // TB
    R0 = TB * L0

    weight_args = (params["wfc1"], params["bfc1"], params["wfc2"], params["bfc2"],
                   params["w1"], params["b1"], params["w2"], params["b2"],
                   params["w3"], params["b3"])

    in_specs = [pl.BlockSpec((TB, latent), lambda i: (i, 0))]
    in_specs += [pl.BlockSpec(a.shape, lambda i: (0, 0)) for a in weight_args]
    # one contiguous lane-dense slab per grid step
    out_specs = pl.BlockSpec((1, G * TB, Cp), lambda i: (i, 0, 0))

    # advisory cost estimate
    flops = 2 * Bp * (latent * hidden + hidden * 64 * L0)
    flops += 2 * nb * (R0 * 64 * (4 * 32) + 2 * R0 * 32 * (4 * 16)
                       + 4 * R0 * 16 * (4 * Cp))
    weights_bytes = sum(int(np.prod(a.shape)) * a.dtype.itemsize
                        for a in weight_args)
    bytes_accessed = weights_bytes + int(z.size) * 4 + nb * G * TB * Cp * 4
    cost = pl.CostEstimate(flops=int(flops),
                           transcendentals=int(2 * G * Bp * Cp),
                           bytes_accessed=int(bytes_accessed))

    # VMEM budget: resident weights + double-buffered I/O blocks + loose bound
    # on intermediates (each row occupies a full 128-lane tile in VMEM), capped
    # well below v7x's 64 MiB per-TensorCore capacity.
    rows_acts = 15 * L0 * TB + TB
    act_bytes = rows_acts * 128 * 4 * 4            # f32 tiles, 4x slack for temps
    io_bytes = 2 * (TB * 128 * 4 + G * TB * max(Cp, 128) * 4)
    vmem_cap = 48 << 20
    try:
        vmem_cap = min(vmem_cap,
                       int(pltpu.get_tpu_info().vmem_capacity_bytes) * 3 // 4)
    except Exception:
        pass
    vmem_limit = int(min(vmem_cap,
                         max(16 << 20, weights_bytes + io_bytes + act_bytes)))

    kernel = _make_kernel(TB, L0, 32, 16, Cp)
    out = pl.pallas_call(
        kernel,
        out_shape=jax.ShapeDtypeStruct((nb, G * TB, Cp), jnp.float32),
        grid=(nb,),
        in_specs=in_specs,
        out_specs=out_specs,
        compiler_params=pltpu.CompilerParams(
            dimension_semantics=("parallel",),
            vmem_limit_bytes=vmem_limit),
        cost_estimate=cost,
    )(z, *weight_args)

    # un-pad + un-permute the parity-split row groups back to NCL order
    y = out.reshape(nb, G, TB, Cp)                       # rows are (g, b) ordered
    y = jnp.transpose(y, (0, 2, 3, 1)).reshape(Bp, Cp, G)
    y = y[:B, :meta["C_out"], :]
    y = jnp.take(y, jnp.asarray(meta["inv_perm"], jnp.int32), axis=2)
    return y                                             # (B, C_out, L3)


# --------------------------------------------------------------------------- #
# numpy f64 reference (correctness check)
# --------------------------------------------------------------------------- #
def ref_conv_transpose1d(x, W, b, stride=2, padding=1, output_padding=0):
    Bn, C_in, L_in = x.shape
    _, C_out, K = W.shape
    L_out = (L_in - 1) * stride - 2 * padding + K + output_padding
    y = np.zeros((Bn, C_out, L_out), dtype=np.float64)
    Wn = np.asarray(W, np.float64)
    for i in range(L_in):
        for k in range(K):
            t = i * stride - padding + k
            if 0 <= t < L_out:
                y[:, :, t] += np.einsum("bc,cd->bd", x[:, :, i], Wn[:, :, k])
    return y + np.asarray(b, np.float64)[None, :, None]


def ref_forward(z, raw, meta):
    z = np.asarray(z, dtype=np.float64)
    h = np.maximum(z @ np.asarray(raw["Wfc1"], np.float64).T
                   + np.asarray(raw["bfc1"], np.float64), 0.0)
    h = np.maximum(h @ np.asarray(raw["Wfc2"], np.float64).T
                   + np.asarray(raw["bfc2"], np.float64), 0.0)
    x = h.reshape(z.shape[0], 64, meta["L0"])
    x = np.maximum(ref_conv_transpose1d(x, raw["W1"], raw["b1"]), 0.0)
    x = np.maximum(ref_conv_transpose1d(x, raw["W2"], raw["b2"]), 0.0)
    x = ref_conv_transpose1d(x, raw["W3"], raw["b3"], output_padding=1)
    return 1.0 / (1.0 + np.exp(-x))


# --------------------------------------------------------------------------- #
# main
# --------------------------------------------------------------------------- #
if __name__ == "__main__":
    latent_size, hidden_size, output_channels, output_length = 8, 32, 4, 16

    key = jax.random.PRNGKey(0)
    kz, kp, kz2 = jax.random.split(key, 3)
    params, raw, meta = make_params(kp, latent_size, hidden_size,
                                    output_channels, output_length)

    # tiny batch (single grid step, TB = 8)
    B = 2
    z = jax.random.normal(kz, (B, latent_size), jnp.float32)
    out = jax.block_until_ready(decoder_forward(z, params, meta))
    assert out.shape == (B, output_channels, output_length + 1), out.shape
    ref = ref_forward(z, raw, meta)
    np.testing.assert_allclose(np.asarray(out), ref, rtol=2e-2, atol=2e-2)

    # larger batch: exercises the bigger batch tile and the multi-step grid
    B2 = 64
    z2 = jax.random.normal(kz2, (B2, latent_size), jnp.float32)
    out2 = jax.block_until_ready(decoder_forward(z2, params, meta))
    assert out2.shape == (B2, output_channels, output_length + 1), out2.shape
    ref2 = ref_forward(z2, raw, meta)
    np.testing.assert_allclose(np.asarray(out2), ref2, rtol=2e-2, atol=2e-2)

    print("KERNEL_OK")
</pallas_src>

<mosaic_0001>
module attributes {stable_mosaic.version = 11 : i64} {
  func.func @kernel(%arg0: i32, %arg1: memref<8x8xf32, #tpu.memory_space<vmem>>, %arg2: memref<8x32xbf16, #tpu.memory_space<vmem>>, %arg3: memref<1x32xf32, #tpu.memory_space<vmem>>, %arg4: memref<32x128xbf16, #tpu.memory_space<vmem>>, %arg5: memref<1x128xf32, #tpu.memory_space<vmem>>, %arg6: memref<64x128xbf16, #tpu.memory_space<vmem>>, %arg7: memref<1x32xf32, #tpu.memory_space<vmem>>, %arg8: memref<32x64xbf16, #tpu.memory_space<vmem>>, %arg9: memref<1x16xf32, #tpu.memory_space<vmem>>, %arg10: memref<16x32xbf16, #tpu.memory_space<vmem>>, %arg11: memref<1x8xf32, #tpu.memory_space<vmem>>, %arg12: memref<1x136x8xf32, #tpu.memory_space<vmem>>) attributes {dimension_semantics = [#tpu.dimension_semantics<parallel>], iteration_bounds = array<i64: 1>, scalar_prefetch = 0 : i64, scratch_operands = 0 : i64, tpu.core_type = #tpu.core_type<tc>, window_params = [{transform_indices = @transform_0, window_bounds = array<i64: 8, 8>}, {pipeline_mode = #tpu.pipeline_mode<synchronous>, transform_indices = @transform_1, window_bounds = array<i64: 8, 32>}, {pipeline_mode = #tpu.pipeline_mode<synchronous>, transform_indices = @transform_2, window_bounds = array<i64: 1, 32>}, {pipeline_mode = #tpu.pipeline_mode<synchronous>, transform_indices = @transform_3, window_bounds = array<i64: 32, 128>}, {pipeline_mode = #tpu.pipeline_mode<synchronous>, transform_indices = @transform_4, window_bounds = array<i64: 1, 128>}, {pipeline_mode = #tpu.pipeline_mode<synchronous>, transform_indices = @transform_5, window_bounds = array<i64: 64, 128>}, {pipeline_mode = #tpu.pipeline_mode<synchronous>, transform_indices = @transform_6, window_bounds = array<i64: 1, 32>}, {pipeline_mode = #tpu.pipeline_mode<synchronous>, transform_indices = @transform_7, window_bounds = array<i64: 32, 64>}, {pipeline_mode = #tpu.pipeline_mode<synchronous>, transform_indices = @transform_8, window_bounds = array<i64: 1, 16>}, {pipeline_mode = #tpu.pipeline_mode<synchronous>, transform_indices = @transform_9, window_bounds = array<i64: 16, 32>}, {pipeline_mode = #tpu.pipeline_mode<synchronous>, transform_indices = @transform_10, window_bounds = array<i64: 1, 8>}, {transform_indices = @transform_11, window_bounds = array<i64: 1, 136, 8>}]} {
    %c0 = arith.constant 0 : index
    %c0_0 = arith.constant 0 : index
    %0 = vector.load %arg1[%c0, %c0_0] : memref<8x8xf32, #tpu.memory_space<vmem>>, vector<8x8xf32>
    %1 = arith.truncf %0 : vector<8x8xf32> to vector<8x8xbf16>
    %c0_1 = arith.constant 0 : index
    %c0_2 = arith.constant 0 : index
    %2 = vector.load %arg2[%c0_1, %c0_2] : memref<8x32xbf16, #tpu.memory_space<vmem>>, vector<8x32xbf16>
    %cst = arith.constant dense<0.000000e+00> : vector<8x32xf32>
    %3 = tpu.matmul %1, %2, %cst {dimension_numbers = #tpu.dot_dimension_numbers<[1], [0], [0], [1], [0, 0, 1, 1], [], []>} : vector<8x8xbf16>, vector<8x32xbf16>, vector<8x32xf32> -> vector<8x32xf32>
    %c0_3 = arith.constant 0 : index
    %c0_4 = arith.constant 0 : index
    %4 = vector.load %arg3[%c0_3, %c0_4] : memref<1x32xf32, #tpu.memory_space<vmem>>, vector<1x32xf32>
    %5 = vector.broadcast %4 : vector<1x32xf32> to vector<8x32xf32>
    %6 = arith.addf %3, %5 : vector<8x32xf32>
    %cst_5 = arith.constant 0.000000e+00 : f32
    %7 = vector.broadcast %cst_5 : f32 to vector<8x32xf32>
    %8 = arith.maximumf %6, %7 : vector<8x32xf32>
    %9 = arith.truncf %8 : vector<8x32xf32> to vector<8x32xbf16>
    %c0_6 = arith.constant 0 : index
    %c0_7 = arith.constant 0 : index
    %10 = vector.load %arg4[%c0_6, %c0_7] : memref<32x128xbf16, #tpu.memory_space<vmem>>, vector<32x128xbf16>
    %cst_8 = arith.constant dense<0.000000e+00> : vector<8x128xf32>
    %11 = tpu.matmul %9, %10, %cst_8 {dimension_numbers = #tpu.dot_dimension_numbers<[1], [0], [0], [1], [0, 0, 1, 1], [], []>} : vector<8x32xbf16>, vector<32x128xbf16>, vector<8x128xf32> -> vector<8x128xf32>
    %c0_9 = arith.constant 0 : index
    %c0_10 = arith.constant 0 : index
    %12 = vector.load %arg5[%c0_9, %c0_10] : memref<1x128xf32, #tpu.memory_space<vmem>>, vector<1x128xf32>
    %13 = vector.broadcast %12 : vector<1x128xf32> to vector<8x128xf32>
    %14 = arith.addf %11, %13 : vector<8x128xf32>
    %cst_11 = arith.constant 0.000000e+00 : f32
    %15 = vector.broadcast %cst_11 : f32 to vector<8x128xf32>
    %16 = arith.maximumf %14, %15 : vector<8x128xf32>
    %17 = vector.extract_strided_slice %16 {offsets = [0, 0], sizes = [8, 64], strides = [1, 1]} : vector<8x128xf32> to vector<8x64xf32>
    %18 = vector.extract_strided_slice %16 {offsets = [0, 64], sizes = [8, 64], strides = [1, 1]} : vector<8x128xf32> to vector<8x64xf32>
    %19 = tpu.concatenate %17, %18 in 0 : vector<8x64xf32>, vector<8x64xf32> -> vector<16x64xf32>
    %20 = arith.truncf %19 : vector<16x64xf32> to vector<16x64xbf16>
    %c0_12 = arith.constant 0 : index
    %c0_13 = arith.constant 0 : index
    %21 = vector.load %arg6[%c0_12, %c0_13] : memref<64x128xbf16, #tpu.memory_space<vmem>>, vector<64x128xbf16>
    %cst_14 = arith.constant dense<0.000000e+00> : vector<16x128xf32>
    %22 = tpu.matmul %20, %21, %cst_14 {dimension_numbers = #tpu.dot_dimension_numbers<[1], [0], [0], [1], [0, 0, 1, 1], [], []>} : vector<16x64xbf16>, vector<64x128xbf16>, vector<16x128xf32> -> vector<16x128xf32>
    %23 = vector.extract_strided_slice %22 {offsets = [0, 0], sizes = [16, 32], strides = [1, 1]} : vector<16x128xf32> to vector<16x32xf32>
    %24 = vector.extract_strided_slice %22 {offsets = [0, 32], sizes = [16, 32], strides = [1, 1]} : vector<16x128xf32> to vector<16x32xf32>
    %25 = vector.extract_strided_slice %22 {offsets = [0, 64], sizes = [16, 32], strides = [1, 1]} : vector<16x128xf32> to vector<16x32xf32>
    %26 = vector.extract_strided_slice %22 {offsets = [0, 96], sizes = [16, 32], strides = [1, 1]} : vector<16x128xf32> to vector<16x32xf32>
    %cst_15 = arith.constant 0.000000e+00 : f32
    %27 = vector.broadcast %cst_15 : f32 to vector<8x32xf32>
    %28 = vector.extract_strided_slice %26 {offsets = [0, 0], sizes = [8, 32], strides = [1, 1]} : vector<16x32xf32> to vector<8x32xf32>
    %29 = tpu.concatenate %27, %28 in 0 : vector<8x32xf32>, vector<8x32xf32> -> vector<16x32xf32>
    %30 = arith.addf %24, %29 : vector<16x32xf32>
    %31 = vector.extract_strided_slice %23 {offsets = [8, 0], sizes = [8, 32], strides = [1, 1]} : vector<16x32xf32> to vector<8x32xf32>
    %cst_16 = arith.constant 0.000000e+00 : f32
    %32 = vector.broadcast %cst_16 : f32 to vector<8x32xf32>
    %33 = tpu.concatenate %31, %32 in 0 : vector<8x32xf32>, vector<8x32xf32> -> vector<16x32xf32>
    %34 = arith.addf %25, %33 : vector<16x32xf32>
    %35 = tpu.concatenate %30, %34 in 0 : vector<16x32xf32>, vector<16x32xf32> -> vector<32x32xf32>
    %c0_17 = arith.constant 0 : index
    %c0_18 = arith.constant 0 : index
    %36 = vector.load %arg7[%c0_17, %c0_18] : memref<1x32xf32, #tpu.memory_space<vmem>>, vector<1x32xf32>
    %37 = vector.broadcast %36 : vector<1x32xf32> to vector<32x32xf32>
    %38 = arith.addf %35, %37 : vector<32x32xf32>
    %cst_19 = arith.constant 0.000000e+00 : f32
    %39 = vector.broadcast %cst_19 : f32 to vector<32x32xf32>
    %40 = arith.maximumf %38, %39 : vector<32x32xf32>
    %41 = arith.truncf %40 : vector<32x32xf32> to vector<32x32xbf16>
    %c0_20 = arith.constant 0 : index
    %c0_21 = arith.constant 0 : index
    %42 = vector.load %arg8[%c0_20, %c0_21] : memref<32x64xbf16, #tpu.memory_space<vmem>>, vector<32x64xbf16>
    %cst_22 = arith.constant dense<0.000000e+00> : vector<32x64xf32>
    %43 = tpu.matmul %41, %42, %cst_22 {dimension_numbers = #tpu.dot_dimension_numbers<[1], [0], [0], [1], [0, 0, 1, 1], [], []>} : vector<32x32xbf16>, vector<32x64xbf16>, vector<32x64xf32> -> vector<32x64xf32>
    %44 = vector.extract_strided_slice %43 {offsets = [0, 0], sizes = [32, 16], strides = [1, 1]} : vector<32x64xf32> to vector<32x16xf32>
    %45 = vector.extract_strided_slice %43 {offsets = [0, 16], sizes = [32, 16], strides = [1, 1]} : vector<32x64xf32> to vector<32x16xf32>
    %46 = vector.extract_strided_slice %43 {offsets = [0, 32], sizes = [32, 16], strides = [1, 1]} : vector<32x64xf32> to vector<32x16xf32>
    %47 = vector.extract_strided_slice %43 {offsets = [0, 48], sizes = [32, 16], strides = [1, 1]} : vector<32x64xf32> to vector<32x16xf32>
    %48 = vector.extract_strided_slice %47 {offsets = [0, 0], sizes = [16, 16], strides = [1, 1]} : vector<32x16xf32> to vector<16x16xf32>
    %49 = vector.extract_strided_slice %47 {offsets = [16, 0], sizes = [16, 16], strides = [1, 1]} : vector<32x16xf32> to vector<16x16xf32>
    %cst_23 = arith.constant 0.000000e+00 : f32
    %50 = vector.broadcast %cst_23 : f32 to vector<8x16xf32>
    %51 = vector.extract_strided_slice %49 {offsets = [0, 0], sizes = [8, 16], strides = [1, 1]} : vector<16x16xf32> to vector<8x16xf32>
    %52 = tpu.concatenate %50, %51 in 0 : vector<8x16xf32>, vector<8x16xf32> -> vector<16x16xf32>
    %53 = tpu.concatenate %52, %48 in 0 : vector<16x16xf32>, vector<16x16xf32> -> vector<32x16xf32>
    %54 = arith.addf %45, %53 : vector<32x16xf32>
    %55 = vector.extract_strided_slice %44 {offsets = [0, 0], sizes = [16, 16], strides = [1, 1]} : vector<32x16xf32> to vector<16x16xf32>
    %56 = vector.extract_strided_slice %44 {offsets = [16, 0], sizes = [16, 16], strides = [1, 1]} : vector<32x16xf32> to vector<16x16xf32>
    %57 = vector.extract_strided_slice %55 {offsets = [8, 0], sizes = [8, 16], strides = [1, 1]} : vector<16x16xf32> to vector<8x16xf32>
    %cst_24 = arith.constant 0.000000e+00 : f32
    %58 = vector.broadcast %cst_24 : f32 to vector<8x16xf32>
    %59 = tpu.concatenate %57, %58 in 0 : vector<8x16xf32>, vector<8x16xf32> -> vector<16x16xf32>
    %60 = tpu.concatenate %56, %59 in 0 : vector<16x16xf32>, vector<16x16xf32> -> vector<32x16xf32>
    %61 = arith.addf %46, %60 : vector<32x16xf32>
    %62 = tpu.concatenate %54, %61 in 0 : vector<32x16xf32>, vector<32x16xf32> -> vector<64x16xf32>
    %c0_25 = arith.constant 0 : index
    %c0_26 = arith.constant 0 : index
    %63 = vector.load %arg9[%c0_25, %c0_26] : memref<1x16xf32, #tpu.memory_space<vmem>>, vector<1x16xf32>
    %64 = vector.broadcast %63 : vector<1x16xf32> to vector<64x16xf32>
    %65 = arith.addf %62, %64 : vector<64x16xf32>
    %cst_27 = arith.constant 0.000000e+00 : f32
    %66 = vector.broadcast %cst_27 : f32 to vector<64x16xf32>
    %67 = arith.maximumf %65, %66 : vector<64x16xf32>
    %68 = arith.truncf %67 : vector<64x16xf32> to vector<64x16xbf16>
    %c0_28 = arith.constant 0 : index
    %c0_29 = arith.constant 0 : index
    %69 = vector.load %arg10[%c0_28, %c0_29] : memref<16x32xbf16, #tpu.memory_space<vmem>>, vector<16x32xbf16>
    %cst_30 = arith.constant dense<0.000000e+00> : vector<64x32xf32>
    %70 = tpu.matmul %68, %69, %cst_30 {dimension_numbers = #tpu.dot_dimension_numbers<[1], [0], [0], [1], [0, 0, 1, 1], [], []>} : vector<64x16xbf16>, vector<16x32xbf16>, vector<64x32xf32> -> vector<64x32xf32>
    %71 = vector.extract_strided_slice %70 {offsets = [0, 0], sizes = [64, 8], strides = [1, 1]} : vector<64x32xf32> to vector<64x8xf32>
    %72 = vector.extract_strided_slice %70 {offsets = [0, 8], sizes = [64, 8], strides = [1, 1]} : vector<64x32xf32> to vector<64x8xf32>
    %73 = vector.extract_strided_slice %70 {offsets = [0, 16], sizes = [64, 8], strides = [1, 1]} : vector<64x32xf32> to vector<64x8xf32>
    %74 = vector.extract_strided_slice %70 {offsets = [0, 24], sizes = [64, 8], strides = [1, 1]} : vector<64x32xf32> to vector<64x8xf32>
    %75 = vector.extract_strided_slice %74 {offsets = [0, 0], sizes = [32, 8], strides = [1, 1]} : vector<64x8xf32> to vector<32x8xf32>
    %76 = vector.extract_strided_slice %74 {offsets = [32, 0], sizes = [32, 8], strides = [1, 1]} : vector<64x8xf32> to vector<32x8xf32>
    %77 = vector.extract_strided_slice %76 {offsets = [0, 0], sizes = [16, 8], strides = [1, 1]} : vector<32x8xf32> to vector<16x8xf32>
    %78 = vector.extract_strided_slice %76 {offsets = [16, 0], sizes = [16, 8], strides = [1, 1]} : vector<32x8xf32> to vector<16x8xf32>
    %cst_31 = arith.constant 0.000000e+00 : f32
    %79 = vector.broadcast %cst_31 : f32 to vector<8x8xf32>
    %80 = vector.extract_strided_slice %78 {offsets = [0, 0], sizes = [8, 8], strides = [1, 1]} : vector<16x8xf32> to vector<8x8xf32>
    %81 = tpu.concatenate %79, %80 in 0 : vector<8x8xf32>, vector<8x8xf32> -> vector<16x8xf32>
    %82 = tpu.concatenate %81, %77 in 0 : vector<16x8xf32>, vector<16x8xf32> -> vector<32x8xf32>
    %83 = tpu.concatenate %82, %75 in 0 : vector<32x8xf32>, vector<32x8xf32> -> vector<64x8xf32>
    %84 = arith.addf %72, %83 : vector<64x8xf32>
    %85 = vector.extract_strided_slice %71 {offsets = [0, 0], sizes = [32, 8], strides = [1, 1]} : vector<64x8xf32> to vector<32x8xf32>
    %86 = vector.extract_strided_slice %71 {offsets = [32, 0], sizes = [32, 8], strides = [1, 1]} : vector<64x8xf32> to vector<32x8xf32>
    %87 = vector.extract_strided_slice %85 {offsets = [0, 0], sizes = [16, 8], strides = [1, 1]} : vector<32x8xf32> to vector<16x8xf32>
    %88 = vector.extract_strided_slice %85 {offsets = [16, 0], sizes = [16, 8], strides = [1, 1]} : vector<32x8xf32> to vector<16x8xf32>
    %89 = vector.extract_strided_slice %87 {offsets = [8, 0], sizes = [8, 8], strides = [1, 1]} : vector<16x8xf32> to vector<8x8xf32>
    %cst_32 = arith.constant 0.000000e+00 : f32
    %90 = vector.broadcast %cst_32 : f32 to vector<8x8xf32>
    %91 = tpu.concatenate %89, %90 in 0 : vector<8x8xf32>, vector<8x8xf32> -> vector<16x8xf32>
    %92 = tpu.concatenate %88, %91 in 0 : vector<16x8xf32>, vector<16x8xf32> -> vector<32x8xf32>
    %93 = tpu.concatenate %86, %92 in 0 : vector<32x8xf32>, vector<32x8xf32> -> vector<64x8xf32>
    %94 = arith.addf %73, %93 : vector<64x8xf32>
    %95 = tpu.concatenate %84, %94 in 0 : vector<64x8xf32>, vector<64x8xf32> -> vector<128x8xf32>
    %c0_33 = arith.constant 0 : index
    %c0_34 = arith.constant 0 : index
    %96 = vector.load %arg11[%c0_33, %c0_34] : memref<1x8xf32, #tpu.memory_space<vmem>>, vector<1x8xf32>
    %97 = vector.broadcast %96 : vector<1x8xf32> to vector<128x8xf32>
    %98 = arith.addf %95, %97 : vector<128x8xf32>
    %99 = vector.extract_strided_slice %74 {offsets = [56, 0], sizes = [8, 8], strides = [1, 1]} : vector<64x8xf32> to vector<8x8xf32>
    %c0_35 = arith.constant 0 : index
    %c0_36 = arith.constant 0 : index
    %100 = vector.load %arg11[%c0_35, %c0_36] : memref<1x8xf32, #tpu.memory_space<vmem>>, vector<1x8xf32>
    %101 = vector.broadcast %100 : vector<1x8xf32> to vector<8x8xf32>
    %102 = arith.addf %99, %101 : vector<8x8xf32>
    %103 = tpu.concatenate %98, %102 in 0 : vector<128x8xf32>, vector<8x8xf32> -> vector<136x8xf32>
    %cst_37 = arith.constant 0.000000e+00 : f32
    %104 = vector.broadcast %cst_37 : f32 to vector<136x8xf32>
    %105 = arith.subf %104, %103 : vector<136x8xf32>
    %106 = math.exp %105 : vector<136x8xf32>
    %cst_38 = arith.constant 1.000000e+00 : f32
    %107 = vector.broadcast %cst_38 : f32 to vector<136x8xf32>
    %108 = arith.addf %107, %106 : vector<136x8xf32>
    %109 = tpu.reciprocal %108 {approx = true} : vector<136x8xf32> -> vector<136x8xf32>
    %c0_39 = arith.constant 0 : index
    %c0_40 = arith.constant 0 : index
    %c0_41 = arith.constant 0 : index
    %110 = vector.load %arg12[%c0_39, %c0_40, %c0_41] : memref<1x136x8xf32, #tpu.memory_space<vmem>>, vector<1x136x8xf32>
    %111 = vector.shape_cast %110 : vector<1x136x8xf32> to vector<136x8xf32>
    %112 = vector.shape_cast %109 : vector<136x8xf32> to vector<1x136x8xf32>
    tpu.vector_store %arg12[%c0_39, %c0_40, %c0_41], %112 {strides = array<i32>} : memref<1x136x8xf32, #tpu.memory_space<vmem>>, vector<1x136x8xf32>,
    return
  }
  func.func @transform_0(%arg0: i32) -> (i32, i32) {
    %c0_i32 = arith.constant 0 : i32
    %c0_i32_0 = arith.constant 0 : i32
    return %arg0, %c0_i32 : i32, i32
  }
  func.func @transform_1(%arg0: i32) -> (i32, i32) {
    %c0_i32 = arith.constant 0 : i32
    %c0_i32_0 = arith.constant 0 : i32
    %c0_i32_1 = arith.constant 0 : i32
    return %c0_i32, %c0_i32_0 : i32, i32
  }
  func.func @transform_2(%arg0: i32) -> (i32, i32) {
    %c0_i32 = arith.constant 0 : i32
    %c0_i32_0 = arith.constant 0 : i32
    %c0_i32_1 = arith.constant 0 : i32
    return %c0_i32, %c0_i32_0 : i32, i32
  }
  func.func @transform_3(%arg0: i32) -> (i32, i32) {
    %c0_i32 = arith.constant 0 : i32
    %c0_i32_0 = arith.constant 0 : i32
    %c0_i32_1 = arith.constant 0 : i32
    return %c0_i32, %c0_i32_0 : i32, i32
  }
  func.func @transform_4(%arg0: i32) -> (i32, i32) {
    %c0_i32 = arith.constant 0 : i32
    %c0_i32_0 = arith.constant 0 : i32
    %c0_i32_1 = arith.constant 0 : i32
    return %c0_i32, %c0_i32_0 : i32, i32
  }
  func.func @transform_5(%arg0: i32) -> (i32, i32) {
    %c0_i32 = arith.constant 0 : i32
    %c0_i32_0 = arith.constant 0 : i32
    %c0_i32_1 = arith.constant 0 : i32
    return %c0_i32, %c0_i32_0 : i32, i32
  }
  func.func @transform_6(%arg0: i32) -> (i32, i32) {
    %c0_i32 = arith.constant 0 : i32
    %c0_i32_0 = arith.constant 0 : i32
    %c0_i32_1 = arith.constant 0 : i32
    return %c0_i32, %c0_i32_0 : i32, i32
  }
  func.func @transform_7(%arg0: i32) -> (i32, i32) {
    %c0_i32 = arith.constant 0 : i32
    %c0_i32_0 = arith.constant 0 : i32
    %c0_i32_1 = arith.constant 0 : i32
    return %c0_i32, %c0_i32_0 : i32, i32
  }
  func.func @transform_8(%arg0: i32) -> (i32, i32) {
    %c0_i32 = arith.constant 0 : i32
    %c0_i32_0 = arith.constant 0 : i32
    %c0_i32_1 = arith.constant 0 : i32
    return %c0_i32, %c0_i32_0 : i32, i32
  }
  func.func @transform_9(%arg0: i32) -> (i32, i32) {
    %c0_i32 = arith.constant 0 : i32
    %c0_i32_0 = arith.constant 0 : i32
    %c0_i32_1 = arith.constant 0 : i32
    return %c0_i32, %c0_i32_0 : i32, i32
  }
  func.func @transform_10(%arg0: i32) -> (i32, i32) {
    %c0_i32 = arith.constant 0 : i32
    %c0_i32_0 = arith.constant 0 : i32
    %c0_i32_1 = arith.constant 0 : i32
    return %c0_i32, %c0_i32_0 : i32, i32
  }
  func.func @transform_11(%arg0: i32) -> (i32, i32, i32) {
    %c0_i32 = arith.constant 0 : i32
    %c0_i32_0 = arith.constant 0 : i32
    %c0_i32_1 = arith.constant 0 : i32
    return %arg0, %c0_i32, %c0_i32_0 : i32, i32, i32
  }
}

</mosaic_0001>

<bundles_post_ra>
// kernel: tpu_custom_call.1
= control target key start
LH: loop header
LB: loop body
LE: loop exit
PB: predicated region body
PF: predicated region fallthrough
CT: control target
= control target key end

     0   :  { %16 = vsyncpa [#allocation3], 0  ;;  %s1561_s0 = inlined_call_operand.hbm [shape: f32[8,8], index: 0, kind: input, shape index: {}]   ;;  %s1562_s1 = inlined_call_operand.hbm [shape: bf16[8,32], index: 1, kind: input, shape index: {}]   ;;  %s1563_s2 = inlined_call_operand.hbm [shape: f32[1,32], index: 2, kind: input, shape index: {}]   ;;  %s1564_s3 = inlined_call_operand.hbm [shape: bf16[32,128], index: 3, kind: input, shape index: {}]   ;;  %s1565_s4 = inlined_call_operand.hbm [shape: f32[1,128], index: 4, kind: input, shape index: {}]   ;;  %s1566_s5 = inlined_call_operand.hbm [shape: bf16[64,128], index: 5, kind: input, shape index: {}]   ;;  %s1567_s6 = inlined_call_operand.hbm [shape: f32[1,32], index: 6, kind: input, shape index: {}]   ;;  %s1568_s7 = inlined_call_operand.hbm [shape: bf16[32,64], index: 7, kind: input, shape index: {}]   ;;  %s1569_s8 = inlined_call_operand.hbm [shape: f32[1,16], index: 8, kind: input, shape index: {}]   ;;  %s1570_s9 = inlined_call_operand.vmem [shape: bf16[16,32], index: 9, kind: input, shape index: {}]   ;;  %s1571_s10 = inlined_call_operand.vmem [shape: f32[1,8], index: 10, kind: input, shape index: {}]   ;;  %s1572_s11 = inlined_call_operand.vmem [shape: f32[1,136,8], index: 11, kind: output, shape index: {}]  }
   0x1   :  { %17 = vsyncpa [#allocation5], 0 }
   0x2   :  { %18 = vsyncpa [#allocation8], 0 }
   0x3   :  { %19 = vsyncpa [#allocation11], 0  ;;  %s37_s19 = sshll.u32 %s1562_s1, 4  ;;  %s38_s19 = int_to_ptr.hbm [resolvable:$true] %s37_s19 }
   0x4   :  { %20 = vsyncpa [#allocation14], 0  ;;  %s1224_s20 = smov [#allocation4]   ;;  %s58_s24 = sshll.u32 %s1564_s3, 4  ;;  %s59_s24 = int_to_ptr.hbm [resolvable:$true] %s58_s24 }
   0x5   :  { %s39_s21 = sshll.u32 %s1224_s20, 4  ;;  %s1225_s25 = smov [#allocation7]   ;;  %s40_s21 = int_to_ptr.vmem [resolvable:$true] %s39_s21 }
   0x6   :  { %42 = dma.hbm_to_vmem [thread:$0]  %s38_s19, 64, %s40_s21, [#allocation5]  }
   0x7   :  { %s60_s26 = sshll.u32 %s1225_s25, 4  ;;  %s1226_s27 = smov 64   ;;  %s61_s26 = int_to_ptr.vmem [resolvable:$true] %s60_s26 }
   0x8   :  { %s1227_s28 = smov 4   ;;  %s82_s30 = sshll.u32 %s1566_s5, 4  ;;  %s83_s30 = int_to_ptr.hbm [resolvable:$true] %s82_s30 }
   0x9   :  { %66 = dma.hbm_to_vmem [thread:$0]  %s59_s24, 256, %s61_s26, [#allocation8], %s1226_s27, %s1226_s27, %s1227_s28  }
   0xa   :  { %s1228_s12 = smov [#allocation10]   ;;  %s106_s15 = sshll.u32 %s1568_s7, 4  ;;  %s107_s15 = int_to_ptr.hbm [resolvable:$true] %s106_s15 }
   0xb   :  { %s84_s13 = sshll.u32 %s1228_s12, 4  ;;  %s1229_s16 = smov [#allocation13]   ;;  %s85_s13 = int_to_ptr.vmem [resolvable:$true] %s84_s13 }
   0xc   :  { %90 = dma.hbm_to_vmem [thread:$0]  %s83_s30, 512, %s85_s13, [#allocation11], %s1226_s27, %s1226_s27, %s1227_s28  }
   0xd   :  { %s108_s17 = sshll.u32 %s1229_s16, 4  ;;  %s26_s20 = sshll.u32 %s1561_s0, 4  ;;  %s109_s17 = int_to_ptr.vmem [resolvable:$true] %s108_s17  ;;  %s27_s20 = int_to_ptr.hbm [resolvable:$true] %s26_s20 }
   0xe   :  { %114 = dma.hbm_to_vmem [thread:$0]  %s107_s15, 256, %s109_s17, [#allocation14], %s1226_s27, %s1226_s27, %s1227_s28  }
   0xf   :  { %s48_s22 = sshll.u32 %s1563_s2, 4  ;;  %s1230_s7 = smov [#allocation2]   ;;  %s49_s22 = int_to_ptr.hbm [resolvable:$true] %s48_s22 }
  0x10   :  { %s28_s23 = sshll.u32 %s1230_s7, 4  ;;  %s1231_s24 = smov [#allocation6]   ;;  %s29_s23 = int_to_ptr.vmem [resolvable:$true] %s28_s23 }
  0x11   :  { %31 = dma.hbm_to_vmem [thread:$0]  %s27_s20, 128, %s29_s23, [#allocation3]  }
  0x12   :  { %s50_s25 = sshll.u32 %s1231_s24, 4  ;;  %s72_s0 = sshll.u32 %s1565_s4, 4  ;;  %s51_s25 = int_to_ptr.vmem [resolvable:$true] %s50_s25  ;;  %s73_s0 = int_to_ptr.hbm [resolvable:$true] %s72_s0 }
  0x13   :  { %53 = dma.hbm_to_vmem [thread:$0]  %s49_s22, 16, %s51_s25, [#allocation5]  }
  0x14   :  { %s96_s30 = sshll.u32 %s1567_s6, 4  ;;  %s1232_s12 = smov [#allocation9]   ;;  %s97_s30 = int_to_ptr.hbm [resolvable:$true] %s96_s30 }
  0x15   :  { %s74_s2 = sshll.u32 %s1232_s12, 4  ;;  %s1233_s13 = smov [#allocation12]   ;;  %s75_s2 = int_to_ptr.vmem [resolvable:$true] %s74_s2 }
  0x16   :  { %77 = dma.hbm_to_vmem [thread:$0]  %s73_s0, 16, %s75_s2, [#allocation8]  }
  0x17   :  { %s98_s14 = sshll.u32 %s1233_s13, 4  ;;  %s120_s16 = sshll.u32 %s1569_s8, 4  ;;  %s99_s14 = int_to_ptr.vmem [resolvable:$true] %s98_s14  ;;  %s121_s16 = int_to_ptr.hbm [resolvable:$true] %s120_s16 }
  0x18   :  { %101 = dma.hbm_to_vmem [thread:$0]  %s97_s30, 16, %s99_s14, [#allocation11]  }
  0x19   :  { %s1234_s4 = smov [#allocation15]  }
  0x1a   :  { %s122_s17 = sshll.u32 %s1234_s4, 4  ;;  %s123_s17 = int_to_ptr.vmem [resolvable:$true] %s122_s17 }
  0x1b   :  { %125 = dma.hbm_to_vmem [thread:$0]  %s121_s16, 16, %s123_s17, [#allocation14]  }
  0x1c   :  { %1214 = dma.done.wait [#allocation3], 128  }
  0x1d   :  { %1215 = vsyncadd [#allocation3], 4294967168 }
  0x1e   :  { %1216 = dma.done.wait [#allocation5], 80  }
  0x1f   :  { %1217 = vsyncadd [#allocation5], 4294967216 }
  0x20   :  { %1218 = dma.done.wait [#allocation8], 272  }
  0x21   :  { %1219 = vsyncadd [#allocation8], 4294967024 }
  0x22   :  { %1220 = dma.done.wait [#allocation11], 528  }
  0x23   :  { %1221 = vsyncadd [#allocation11], 4294966768 }
  0x24   :  { %1222 = dma.done.wait [#allocation14], 272  }
  0x25   :  { %1223 = vsyncadd [#allocation14], 4294967024  ;;  %vm178_vm0 = vcmask 1043456   ;;  %v169_v0 = vld [vmem:[#allocation4] sm:$0xf]  ;;  %v167_v1 = vld [vmem:[#allocation2] sm:$0xff] }
  0x26   :  { %v180_v2 = vsel %vm178_vm0, %v169_v0, 0  ;;  %v168_v3 = vpack.c.bf16 %v167_v1, %v167_v1  ;;  %vm174_vm1 = vcmask 64512   ;;  %v895_v4 = vld [vmem:[#allocation7 + $0x8] sm:$0xff]  ;;  %v894_v5 = vld [vmem:[#allocation7] sm:$0xff]  ;;  %v925_v6 = vld [vmem:[#allocation6] ss:$0 sm:$0xff] }
  0x27   :  { %189 = vmatpush.bf16.msra.mxu0 %v180_v2  ;;  %227 = vmatpush.bf16.msra.mxu2 %v895_v4  ;;  %vm217_vm2 = vcmask 261120   ;;  %v899_v12 = vld [vmem:[#allocation10 + $0x18] sm:$0xff]  ;;  %v898_v13 = vld [vmem:[#allocation10 + $0x10] sm:$0xff]  ;;  %v897_v14 = vld [vmem:[#allocation10 + $0x8] sm:$0xff]  ;;  %v1235_v21 = vmov 0.0   ;;  %s1236_s6 = smov 32  }
  0x28   :  { %v896_v15 = vld [vmem:[#allocation10] sm:$0xff]  ;;  %v926_v16 = vld [vmem:[#allocation9] ss:$0 sm:$0xff]  ;;  %294 = vrot.lane.b32.xlu2 %v1235_v21, %s1236_s6  ;;  %vm272_vm3 = vcmask 523264   ;;  %s1237_s8 = smov 96   ;;  %v901_v42 = vld [vmem:[#allocation13 + $0x8] sm:$0xff] }
  0x29   :  { %v927_v25 = vld [vmem:[#allocation12] ss:$0 sm:$0xff]  ;;  %369 = vmatpush.bf16.msra.mxu3 %v901_v42  ;;  %v900_v43 = vld [vmem:[#allocation13] sm:$0xff]  ;;  %s1239_s18 = smov 16   ;;  %v928_v58 = vld [vmem:[#allocation15] ss:$0 sm:$0xff] }
  0x2a   :  { %849 = vmatmul.msk.bf16.vlgmr.msra.gmra.mxu0 %vm174_vm1, %v168_v3  ;;  %s1240_s19 = smov 112   ;;  %vm483_vm4 = vcmask 130048   ;;  %s1241_s22 = smov 24  }
  0x2b   :  { %228 = vmatpush.bf16.msra.mxu2 %v894_v5  ;;  %s1242_s7 = smov 104   ;;  %s1244_s23 = smov 120  }
  0x2d   :  { %370 = vmatpush.bf16.msra.mxu3 %v900_v43 }
  0x2f   :  { %280 = vmatpush.bf16.msrb.mxu2 %v899_v12 }
  0x33   :  { %281 = vmatpush.bf16.msrb.mxu2 %v898_v13 }
  0x37   :  { %282 = vmatpush.bf16.msrb.mxu2 %v897_v14 }
  0x3b   :  { %283 = vmatpush.bf16.msrb.mxu2 %v896_v15  ;;  %v902_v15 = vld [vmem:[%s1570_s9] sm:$0xff] }
  0x3c   :  { %503 = vmatpush.bf16.msrb.mxu0 %v902_v15  ;;  %903 = vmatpush.bf16.msra.mxu1 %v902_v15 }
  0x82   :  { %v295_v32 = vpop.permute.xlu2 %294 }
  0xa7   :  { %v191_v7 = vpop.f32.mrf.mxu0 }
  0xa8   :  { %v192_v8 = vadd.f32 %v925_v6, %v191_v7 }
  0xaa   :  { %v195_v9 = vmax.f32 %v192_v8, 0.0 }
  0xac   :  { %v196_v10 = vpack.c.bf16 %v195_v9, %v195_v9 }
  0xae   :  { %858 = vmatmul.msk.bf16.vlgmr.msra.gmra.mxu2 %vm217_vm2, %v196_v10 }
  0xaf   :  { %v193_v11 = vpop.f32.mrf.mxu0 }
 0x131   :  { %v230_v17 = vpop.f32.mrf.mxu2 }
 0x132   :  { %v231_v18 = vadd.f32 %v926_v16, %v230_v17 }
 0x134   :  { %v234_v19 = vmax.f32 %v231_v18, 0.0 }
 0x136   :  { %236 = vrot.lane.b32.xlu0 %v234_v19, %s1226_s27 }
 0x139   :  { %v232_v20 = vpop.f32.mrf.mxu2 }
 0x1a8   :  { %v237_v22 = vpop.permute.xlu0 %236 }
 0x1a9   :  { %v239_v23 = vpack.c.bf16 %v237_v22, %v234_v19 }
 0x1ab   :  { %875 = vmatmul.msk.bf16.vlgmr.msrb.gmra.mxu2 %vm272_vm3, %v239_v23 }
 0x22e   :  { %v285_v24 = vpop.f32.mrf.mxu2 }
 0x22f   :  { %291 = vrot.lane.b32.xlu0 %v285_v24, %s1236_s6  ;;  %v300_v34 = vadd.f32 %v295_v32, %v285_v24 }
 0x236   :  { %v287_v26 = vpop.f32.mrf.mxu2 }
 0x237   :  { %322 = vrot.lane.b32.xlu0 %v927_v25, %s1236_s6  ;;  %303 = vrot.lane.b32.xlu1 %v287_v26, %s1226_s27 }
 0x23f   :  { %305 = vrot.lane.b32.xlu1 %v1235_v21, %s1226_s27  ;;  %s1238_s27 = smov 80  }
 0x2a1   :  { %v292_v27 = vpop.permute.xlu0 %291 }
 0x2a2   :  { %296 = vrot.lane.b32.xlu2 %v292_v27, %s1236_s6 }
 0x2a9   :  { %v304_v28 = vpop.permute.xlu1 %303  ;;  %v323_v33 = vpop.permute.xlu0 %322 }
 0x2aa   :  { %v309_v29 = vadd.f32 %v304_v28, %v285_v24  ;;  %v325_v36 = vadd.f32 %v323_v33, %v300_v34 }
 0x2ac   :  { %313 = vrot.lane.b32.xlu1 %v309_v29, %s1237_s8  ;;  %v329_v40 = vmax.f32 %v325_v36, 0.0 }
 0x2b1   :  { %v306_v30 = vpop.permute.xlu1 %305 }
 0x2b2   :  { %v310_v31 = vadd.f32 %v306_v30, %v287_v26 }
 0x2b4   :  { %315 = vrot.lane.b32.xlu2 %v310_v31, %s1237_s8 }
 0x2fc   :  { %v297_v35 = vpop.permute.xlu2 %296 }
 0x2fd   :  { %v301_v37 = vadd.f32 %v297_v35, %v287_v26 }
 0x2ff   :  { %v326_v38 = vadd.f32 %v323_v33, %v301_v37 }
 0x301   :  { %v330_v39 = vmax.f32 %v326_v38, 0.0 }
 0x303   :  { %v333_v41 = vpack.c.bf16 %v330_v39, %v329_v40  ;;  %v1377_v40 = vld [vmem:[%s1571_s10] ss:$0 sm:$0xff]  ;;  %s1243_s10 = smov 8  }
 0x305   :  { %341 = vrot.lane.b32.xlu0 %v333_v41, %s1237_s8 }
 0x30e   :  { %v316_v44 = vpop.permute.xlu2 %315 }
 0x30f   :  { %v328_v45 = vadd.f32 %v323_v33, %v316_v44 }
 0x311   :  { %v332_v48 = vmax.f32 %v328_v45, 0.0 }
 0x31e   :  { %v314_v46 = vpop.permute.xlu1 %313 }
 0x31f   :  { %v327_v47 = vadd.f32 %v323_v33, %v314_v46 }
 0x321   :  { %v331_v49 = vmax.f32 %v327_v47, 0.0 }
 0x323   :  { %v334_v50 = vpack.c.bf16 %v332_v48, %v331_v49 }
 0x325   :  { %343 = vrot.lane.b32.xlu1 %v334_v50, %s1237_s8 }
 0x377   :  { %v342_v51 = vpop.permute.xlu0 %341 }
 0x378   :  { %884 = vmatmul.msk.bf16.vlgmr.msra.gmra.mxu3 %vm217_vm2, %v342_v51 }
 0x397   :  { %v344_v52 = vpop.permute.xlu1 %343 }
 0x398   :  { %885 = vmatmul.msk.bf16.gmra.mxu3 %vm217_vm2, %v344_v52 }
 0x3fb   :  { %v372_v53 = vpop.f32.mrf.mxu3 }
 0x403   :  { %v374_v54 = vpop.f32.mrf.mxu3 }
 0x41b   :  { %v377_v55 = vpop.f32.mrf.mxu3 }
 0x41c   :  { %408 = vrot.lane.b32.xlu0 %v377_v55, %s1236_s6  ;;  %383 = vrot.lane.b32.xlu2 %v377_v55, %s1238_s27 }
 0x423   :  { %v379_v56 = vpop.f32.mrf.mxu3 }
 0x424   :  { %389 = vrot.lane.b32.xlu0 %v374_v54, %s1238_s27  ;;  %387 = vrot.lane.b32.xlu2 %v372_v53, %s1238_s27  ;;  %v420_v0 = vadd.f32 %v379_v56, %v295_v32 }
 0x425   :  { %410 = vrot.lane.b32.xlu1 %v379_v56, %s1236_s6 }
 0x42c   :  { %391 = vrot.lane.b32.xlu2 %v1235_v21, %s1239_s18 }
 0x42d   :  { %412 = vrot.lane.b32.xlu1 %v374_v54, %s1236_s6 }
 0x476   :  { %v384_v57 = vpop.permute.xlu2 %383 }
 0x477   :  { %393 = vrot.lane.b32.xlu0 %v384_v57, %s1239_s18 }
 0x47e   :  { %v388_v62 = vpop.permute.xlu2 %387 }
 0x47f   :  { %440 = vrot.lane.b32.xlu0 %v928_v58, %s1239_s18 }
 0x486   :  { %v1364_v5 = vpop.permute.xlu2 %391 }
 0x487   :  { %v403_v6 = vadd.f32 %v1364_v5, %v372_v53 }
 0x48e   :  { %v409_v59 = vpop.permute.xlu0 %408 }
 0x48f   :  { %v417_v60 = vadd.f32 %v409_v59, %v372_v53 }
 0x491   :  { %425 = vrot.lane.b32.xlu1 %v417_v60, %s1240_s19 }
 0x496   :  { %v390_v3 = vpop.permute.xlu0 %389 }
 0x497   :  { %v411_v61 = vpop.permute.xlu1 %410 }
 0x498   :  { %v418_v63 = vadd.f32 %v411_v61, %v374_v54 }
 0x499   :  { %395 = vrot.lane.b32.xlu1 %v388_v62, %s1239_s18 }
 0x49a   :  { %427 = vrot.lane.b32.xlu2 %v418_v63, %s1240_s19 }
 0x49f   :  { %v413_v1 = vpop.permute.xlu1 %412 }
 0x4a0   :  { %v419_v2 = vadd.f32 %v413_v1, %v377_v55 }
 0x4a1   :  { %431 = vrot.lane.b32.xlu1 %v420_v0, %s1240_s19 }
 0x4a2   :  { %397 = vrot.lane.b32.xlu2 %v390_v3, %s1239_s18  ;;  %429 = vrot.lane.b32.xlu0 %v419_v2, %s1240_s19 }
 0x4e9   :  { %v394_v4 = vpop.permute.xlu0 %393 }
 0x4ea   :  { %v404_v7 = vadd.f32 %v394_v4, %v374_v54 }
 0x4f1   :  { %v441_v8 = vpop.permute.xlu0 %440 }
 0x4f2   :  { %v443_v9 = vadd.f32 %v441_v8, %v403_v6  ;;  %v444_v10 = vadd.f32 %v441_v8, %v404_v7 }
 0x4f4   :  { %v451_v11 = vmax.f32 %v443_v9, 0.0  ;;  %v452_v12 = vmax.f32 %v444_v10, 0.0  ;;  %v428_v14 = vpop.permute.xlu2 %427 }
 0x4f5   :  { %v448_v16 = vadd.f32 %v441_v8, %v428_v14 }
 0x4f6   :  { %v459_v13 = vpack.c.bf16 %v452_v12, %v451_v11 }
 0x4f7   :  { %v456_v20 = vmax.f32 %v448_v16, 0.0 }
 0x4f8   :  { %469 = vrot.lane.b32.xlu2 %v459_v13, %s1240_s19 }
 0x4fc   :  { %v398_v19 = vpop.permute.xlu2 %397 }
 0x4fd   :  { %v406_v23 = vadd.f32 %v398_v19, %v379_v56 }
 0x4ff   :  { %v446_v26 = vadd.f32 %v441_v8, %v406_v23 }
 0x501   :  { %v454_v29 = vmax.f32 %v446_v26, 0.0 }
 0x503   :  { %v426_v17 = vpop.permute.xlu1 %425 }
 0x504   :  { %v447_v18 = vadd.f32 %v441_v8, %v426_v17 }
 0x506   :  { %v455_v22 = vmax.f32 %v447_v18, 0.0 }
 0x508   :  { %v461_v24 = vpack.c.bf16 %v456_v20, %v455_v22 }
 0x50a   :  { %473 = vrot.lane.b32.xlu0 %v461_v24, %s1240_s19 }
 0x50b   :  { %v396_v25 = vpop.permute.xlu1 %395 }
 0x50c   :  { %v405_v27 = vadd.f32 %v396_v25, %v377_v55 }
 0x50e   :  { %v445_v28 = vadd.f32 %v441_v8, %v405_v27 }
 0x510   :  { %v453_v30 = vmax.f32 %v445_v28, 0.0 }
 0x512   :  { %v460_v31 = vpack.c.bf16 %v454_v29, %v453_v30 }
 0x513   :  { %v432_v32 = vpop.permute.xlu1 %431 }
 0x514   :  { %v430_v33 = vpop.permute.xlu0 %429  ;;  %v450_v34 = vadd.f32 %v441_v8, %v432_v32  ;;  %471 = vrot.lane.b32.xlu1 %v460_v31, %s1240_s19 }
 0x515   :  { %v449_v35 = vadd.f32 %v441_v8, %v430_v33 }
 0x516   :  { %v458_v36 = vmax.f32 %v450_v34, 0.0 }
 0x517   :  { %v457_v37 = vmax.f32 %v449_v35, 0.0 }
 0x519   :  { %v462_v38 = vpack.c.bf16 %v458_v36, %v457_v37 }
 0x51b   :  { %475 = vrot.lane.b32.xlu2 %v462_v38, %s1240_s19 }
 0x523   :  { %662 = vrot.lane.b32.xlu2 %v1377_v40, %s1241_s22 }
 0x552   :  { %v470_v39 = vpop.permute.xlu2 %469 }
 0x553   :  { %890 = vmatmul.msk.bf16.vlgmr.msrb.gmra.mxu0 %vm483_vm4, %v470_v39 }
 0x575   :  { %v476_v43 = vpop.permute.xlu2 %475 }
 0x57c   :  { %v474_v41 = vpop.permute.xlu0 %473 }
 0x57d   :  { %892 = vmatmul.msk.bf16.vlgmr.msra.gmra.mxu1 %vm483_vm4, %v474_v41  ;;  %v663_v53 = vpop.permute.xlu2 %662 }
 0x586   :  { %v472_v42 = vpop.permute.xlu1 %471 }
 0x587   :  { %891 = vmatmul.msk.bf16.gmra.mxu0 %vm483_vm4, %v472_v42 }
 0x58d   :  { %893 = vmatmul.msk.bf16.gmra.mxu1 %vm483_vm4, %v476_v43 }
 0x5d0   :  { %v1380_v44 = vpop.f32.mrf.mxu0 }
 0x5d1   :  { %538 = vrot.lane.b32.xlu0 %v1380_v44, %s1242_s7 }
 0x5d8   :  { %v1386_v46 = vpop.f32.mrf.mxu0 }
 0x5fa   :  { %v1383_v45 = vpop.f32.mrf.mxu1 }
 0x5fb   :  { %530 = vrot.lane.b32.xlu1 %v1383_v45, %s1242_s7 }
 0x602   :  { %v1388_v47 = vpop.f32.mrf.mxu1 }
 0x603   :  { %540 = vrot.lane.b32.xlu1 %v1386_v46, %s1242_s7  ;;  %532 = vrot.lane.b32.xlu2 %v1388_v47, %s1242_s7 }
 0x604   :  { %v1392_v48 = vpop.f32.mrf.mxu0 }
 0x60a   :  { %v1394_v49 = vpop.f32.mrf.mxu1 }
 0x60b   :  { %579 = vrot.lane.b32.xlu1 %v1383_v45, %s1239_s18  ;;  %526 = vrot.lane.b32.xlu0 %v1394_v49, %s1242_s7 }
 0x60c   :  { %542 = vrot.lane.b32.xlu2 %v1392_v48, %s1242_s7  ;;  %v1400_v50 = vpop.f32.mrf.mxu0 }
 0x612   :  { %v1407_v51 = vpop.f32.mrf.mxu1 }
 0x613   :  { %591 = vrot.lane.b32.xlu1 %v1386_v46, %s1239_s18  ;;  %544 = vrot.lane.b32.xlu0 %v1400_v50, %s1242_s7  ;;  %v607_v0 = vadd.f32 %v1407_v51, %v1364_v5  ;;  %v665_v9 = vadd.f32 %v663_v53, %v1407_v51 }
 0x614   :  { %581 = vrot.lane.b32.xlu2 %v1388_v47, %s1239_s18 }
 0x61b   :  { %585 = vrot.lane.b32.xlu1 %v1407_v51, %s1239_s18  ;;  %583 = vrot.lane.b32.xlu0 %v1394_v49, %s1239_s18 }
 0x61c   :  { %587 = vrot.lane.b32.xlu2 %v1392_v48, %s1239_s18 }
 0x623   :  { %589 = vrot.lane.b32.xlu0 %v1400_v50, %s1239_s18 }
 0x62b   :  { %546 = vrot.lane.b32.xlu0 %v1235_v21, %s1243_s10 }
 0x643   :  { %v539_v52 = vpop.permute.xlu0 %538 }
 0x644   :  { %554 = vrot.lane.b32.xlu1 %v539_v52, %s1243_s10 }
 0x65d   :  { %v533_v54 = vpop.permute.xlu2 %532 }
 0x65e   :  { %552 = vrot.lane.b32.xlu0 %v533_v54, %s1243_s10 }
 0x666   :  { %v543_v55 = vpop.permute.xlu2 %542 }
 0x667   :  { %558 = vrot.lane.b32.xlu0 %v543_v55, %s1243_s10 }
 0x66d   :  { %v531_v56 = vpop.permute.xlu1 %530 }
 0x66e   :  { %v582_v57 = vpop.permute.xlu2 %581  ;;  %550 = vrot.lane.b32.xlu2 %v531_v56, %s1243_s10 }
 0x66f   :  { %v601_v58 = vadd.f32 %v582_v57, %v1386_v46 }
 0x671   :  { %618 = vrot.lane.b32.xlu0 %v601_v58, %s1244_s23 }
 0x675   :  { %v541_v21 = vpop.permute.xlu1 %540 }
 0x676   :  { %v588_v59 = vpop.permute.xlu2 %587  ;;  %556 = vrot.lane.b32.xlu2 %v541_v21, %s1243_s10 }
 0x677   :  { %v604_v60 = vadd.f32 %v588_v59, %v1383_v45 }
 0x679   :  { %624 = vrot.lane.b32.xlu0 %v604_v60, %s1244_s23 }
 0x67d   :  { %v527_v61 = vpop.permute.xlu0 %526  ;;  %v580_v62 = vpop.permute.xlu1 %579 }
 0x67e   :  { %v600_v63 = vadd.f32 %v580_v62, %v1380_v44  ;;  %548 = vrot.lane.b32.xlu1 %v527_v61, %s1243_s10 }
 0x680   :  { %616 = vrot.lane.b32.xlu2 %v600_v63, %s1244_s23 }
 0x681   :  { %630 = vrot.lane.b32.xlu0 %v607_v0, %s1244_s23 }
 0x685   :  { %v545_v1 = vpop.permute.xlu0 %544  ;;  %v592_v2 = vpop.permute.xlu1 %591 }
 0x686   :  { %v606_v3 = vadd.f32 %v592_v2, %v1394_v49  ;;  %560 = vrot.lane.b32.xlu1 %v545_v1, %s1243_s10 }
 0x688   :  { %628 = vrot.lane.b32.xlu2 %v606_v3, %s1244_s23 }
 0x68d   :  { %v584_v4 = vpop.permute.xlu0 %583  ;;  %v586_v6 = vpop.permute.xlu1 %585 }
 0x68e   :  { %v602_v7 = vadd.f32 %v584_v4, %v1392_v48  ;;  %v603_v8 = vadd.f32 %v586_v6, %v1400_v50 }
 0x690   :  { %620 = vrot.lane.b32.xlu1 %v602_v7, %s1244_s23  ;;  %622 = vrot.lane.b32.xlu2 %v603_v8, %s1244_s23 }
 0x695   :  { %v590_v5 = vpop.permute.xlu0 %589 }
 0x696   :  { %v605_v10 = vadd.f32 %v590_v5, %v1388_v47 }
 0x698   :  { %626 = vrot.lane.b32.xlu1 %v605_v10, %s1244_s23  ;;  %667 = vrot.lane.b32.xlu2 %v665_v9, %s1240_s19 }
 0x69d   :  { %v547_v16 = vpop.permute.xlu0 %546 }
 0x69e   :  { %v570_v22 = vadd.f32 %v547_v16, %v1380_v44 }
 0x6a0   :  { %643 = vrot.lane.b32.xlu1 %v1377_v40, %s1243_s10 }
 0x6b6   :  { %v555_v11 = vpop.permute.xlu1 %554 }
 0x6b7   :  { %v574_v23 = vadd.f32 %v555_v11, %v1383_v45 }
 0x6c8   :  { %v551_v14 = vpop.permute.xlu2 %550 }
 0x6c9   :  { %v572_v24 = vadd.f32 %v551_v14, %v1392_v48 }
 0x6d0   :  { %v557_v17 = vpop.permute.xlu2 %556  ;;  %v553_v19 = vpop.permute.xlu0 %552 }
 0x6d1   :  { %v575_v25 = vadd.f32 %v557_v17, %v1388_v47  ;;  %v573_v26 = vadd.f32 %v553_v19, %v1400_v50 }
 0x6d9   :  { %v559_v38 = vpop.permute.xlu0 %558 }
 0x6da   :  { %v617_v20 = vpop.permute.xlu2 %616  ;;  %v576_v47 = vadd.f32 %v559_v38, %v1394_v49 }
 0x6e2   :  { %v629_v42 = vpop.permute.xlu2 %628 }
 0x6ea   :  { %v623_v61 = vpop.permute.xlu2 %622 }
 0x6f0   :  { %v549_v12 = vpop.permute.xlu1 %548 }
 0x6f1   :  { %v571_v27 = vadd.f32 %v549_v12, %v1386_v46 }
 0x6f8   :  { %v561_v13 = vpop.permute.xlu1 %560 }
 0x6f9   :  { %v577_v43 = vadd.f32 %v561_v13, %v1407_v51  ;;  %v619_v51 = vpop.permute.xlu0 %618 }
 0x702   :  { %v621_v15 = vpop.permute.xlu1 %620 }
 0x70a   :  { %v1447_v18 = vpop.permute.xlu1 %626 }
 0x712   :  { %v1455_v28 = vpop.permute.xlu1 %643 }
 0x713   :  { %v650_v29 = vadd.f32 %v1455_v28, %v574_v23  ;;  %v648_v30 = vadd.f32 %v1455_v28, %v572_v24  ;;  %v646_v31 = vadd.f32 %v1455_v28, %v570_v22  ;;  %v651_v32 = vadd.f32 %v1455_v28, %v575_v25 }
 0x714   :  { %v647_v33 = vadd.f32 %v1455_v28, %v571_v27  ;;  %v649_v34 = vadd.f32 %v1455_v28, %v573_v26  ;;  %v653_v50 = vadd.f32 %v1455_v28, %v577_v43  ;;  %v654_v53 = vadd.f32 %v1455_v28, %v617_v20 }
 0x715   :  { %v674_v35 = vsub.f32 0.0, %v650_v29  ;;  %v672_v36 = vsub.f32 0.0, %v648_v30  ;;  %v670_v37 = vsub.f32 0.0, %v646_v31  ;;  %v675_v39 = vsub.f32 0.0, %v651_v32 }
 0x716   :  { %v671_v40 = vsub.f32 0.0, %v647_v33  ;;  %v673_v41 = vsub.f32 0.0, %v649_v34  ;;  %v652_v55 = vadd.f32 %v1455_v28, %v576_v47  ;;  %v677_v56 = vsub.f32 0.0, %v653_v50 }
 0x717   :  { %v695_v44 = vmul.f32 1.442695, %v674_v35  ;;  %v691_v45 = vmul.f32 1.442695, %v672_v36  ;;  %v687_v46 = vmul.f32 1.442695, %v670_v37  ;;  %v656_v0 = vadd.f32 %v1455_v28, %v621_v15  ;;  %v625_v15 = vpop.permute.xlu0 %624 }
 0x718   :  { %v689_v48 = vmul.f32 1.442695, %v671_v40  ;;  %v697_v52 = vmul.f32 1.442695, %v675_v39  ;;  %v693_v54 = vmul.f32 1.442695, %v673_v41  ;;  %v657_v3 = vadd.f32 %v1455_v28, %v623_v61  ;;  %v668_v41 = vpop.permute.xlu2 %667 }
 0x719   :  { %930 = vpow2.f32 %v695_v44  ;;  %v678_v57 = vsub.f32 0.0, %v654_v53  ;;  %v676_v49 = vsub.f32 0.0, %v652_v55  ;;  %v701_v63 = vmul.f32 1.442695, %v677_v56 }
 0x71a   :  { %932 = vpow2.f32 %v691_v45  ;;  %v655_v7 = vadd.f32 %v1455_v28, %v619_v51  ;;  %v680_v9 = vsub.f32 0.0, %v656_v0  ;;  %v681_v11 = vsub.f32 0.0, %v657_v3 }
 0x71b   :  { %934 = vpow2.f32 %v687_v46  ;;  %v703_v2 = vmul.f32 1.442695, %v678_v57  ;;  %v699_v6 = vmul.f32 1.442695, %v676_v49  ;;  %v659_v20 = vadd.f32 %v1455_v28, %v1447_v18 }
 0x71c   :  { %936 = vpow2.f32 %v689_v48  ;;  %v679_v13 = vsub.f32 0.0, %v655_v7  ;;  %v707_v19 = vmul.f32 1.442695, %v680_v9  ;;  %v709_v23 = vmul.f32 1.442695, %v681_v11 }
 0x71d   :  { %938 = vpow2.f32 %v697_v52  ;;  %v660_v24 = vadd.f32 %v1455_v28, %v629_v42  ;;  %v658_v27 = vadd.f32 %v1455_v28, %v625_v15  ;;  %v683_v31 = vsub.f32 0.0, %v659_v20 }
 0x71e   :  { %940 = vpow2.f32 %v693_v54  ;;  %v705_v26 = vmul.f32 1.442695, %v679_v13  ;;  %v686_v48 = vsub.f32 0.0, %v668_v41 }
 0x71f   :  { %v931_v58 = vpop.eup %930  ;;  %v684_v32 = vsub.f32 0.0, %v660_v24  ;;  %v682_v34 = vsub.f32 0.0, %v658_v27  ;;  %v713_v38 = vmul.f32 1.442695, %v683_v31  ;;  %v631_v40 = vpop.permute.xlu0 %630 }
 0x720   :  { %v933_v21 = vpop.eup %932  ;;  %v725_v59 = vadd.f32 1.0, %v931_v58  ;;  %v661_v45 = vadd.f32 %v1455_v28, %v631_v40  ;;  %v719_v51 = vmul.f32 1.442695, %v686_v48 }
 0x721   :  { %v935_v60 = vpop.eup %934  ;;  %v723_v62 = vadd.f32 1.0, %v933_v21  ;;  %v715_v42 = vmul.f32 1.442695, %v684_v32  ;;  %v711_v44 = vmul.f32 1.442695, %v682_v34 }
 0x722   :  { %942 = vrcp.f32 %v725_v59  ;;  %v721_v1 = vadd.f32 1.0, %v935_v60  ;;  %v937_v4 = vpop.eup %936  ;;  %v685_v53 = vsub.f32 0.0, %v661_v45 }
 0x723   :  { %944 = vrcp.f32 %v723_v62  ;;  %v939_v8 = vpop.eup %938  ;;  %v722_v10 = vadd.f32 1.0, %v937_v4 }
 0x724   :  { %946 = vrcp.f32 %v721_v1  ;;  %v941_v5 = vpop.eup %940  ;;  %v726_v12 = vadd.f32 1.0, %v939_v8  ;;  %v717_v58 = vmul.f32 1.442695, %v685_v53 }
 0x725   :  { %948 = vpow2.f32 %v701_v63  ;;  %v724_v16 = vadd.f32 1.0, %v941_v5 }
 0x726   :  { %950 = vpow2.f32 %v703_v2 }
 0x727   :  { %952 = vpow2.f32 %v699_v6 }
 0x728   :  { %v943_v14 = vpop.eup %942  ;;  %954 = vrcp.f32 %v722_v10 }
 0x729   :  { %v945_v17 = vpop.eup %944  ;;  %780 = vrot.lane.b32.xlu1 %v943_v14, %s1244_s23  ;;  %956 = vrcp.f32 %v726_v12 }
 0x72a   :  { %v947_v22 = vpop.eup %946  ;;  %776 = vrot.lane.b32.xlu2 %v945_v17, %s1244_s23  ;;  %958 = vrcp.f32 %v724_v16 }
 0x72b   :  { %v949_v25 = vpop.eup %948  ;;  %772 = vrot.lane.b32.xlu0 %v947_v22, %s1244_s23  ;;  %960 = vpow2.f32 %v707_v19 }
 0x72c   :  { %v951_v29 = vpop.eup %950  ;;  %v728_v18 = vadd.f32 1.0, %v949_v25  ;;  %962 = vpow2.f32 %v709_v23 }
 0x72d   :  { %v953_v30 = vpop.eup %952  ;;  %v729_v33 = vadd.f32 1.0, %v951_v29  ;;  %964 = vpow2.f32 %v705_v26 }
 0x72e   :  { %v955_v35 = vpop.eup %954  ;;  %v727_v36 = vadd.f32 1.0, %v953_v30  ;;  %966 = vrcp.f32 %v728_v18 }
 0x72f   :  { %v957_v37 = vpop.eup %956  ;;  %968 = vrcp.f32 %v729_v33 }
 0x730   :  { %v959_v39 = vpop.eup %958  ;;  %970 = vrcp.f32 %v727_v36 }
 0x731   :  { %774 = vrot.lane.b32.xlu1 %v955_v35, %s1244_s23  ;;  %v961_v43 = vpop.eup %960  ;;  %972 = vpow2.f32 %v713_v38 }
 0x732   :  { %782 = vrot.lane.b32.xlu2 %v957_v37, %s1244_s23  ;;  %v963_v46 = vpop.eup %962  ;;  %v731_v50 = vadd.f32 1.0, %v961_v43  ;;  %974 = vpow2.f32 %v715_v42 }
 0x733   :  { %778 = vrot.lane.b32.xlu0 %v959_v39, %s1244_s23  ;;  %v965_v47 = vpop.eup %964  ;;  %v732_v52 = vadd.f32 1.0, %v963_v46  ;;  %976 = vpow2.f32 %v711_v44 }
 0x734   :  { %v967_v54 = vpop.eup %966  ;;  %v730_v55 = vadd.f32 1.0, %v965_v47  ;;  %978 = vrcp.f32 %v731_v50 }
 0x735   :  { %v969_v56 = vpop.eup %968  ;;  %980 = vrcp.f32 %v732_v52 }
 0x736   :  { %v971_v57 = vpop.eup %970  ;;  %982 = vrcp.f32 %v730_v55 }
 0x737   :  { %v973_v28 = vpop.eup %972  ;;  %984 = vpow2.f32 %v719_v51 }
 0x738   :  { %v975_v49 = vpop.eup %974  ;;  %v734_v59 = vadd.f32 1.0, %v973_v28  ;;  %986 = vpow2.f32 %v717_v58 }
 0x739   :  { %786 = vrot.lane.b32.xlu1 %v967_v54, %s1244_s23  ;;  %v977_v21 = vpop.eup %976  ;;  %v735_v60 = vadd.f32 1.0, %v975_v49 }
 0x73a   :  { %788 = vrot.lane.b32.xlu2 %v969_v56, %s1244_s23  ;;  %v979_v61 = vpop.eup %978  ;;  %v733_v62 = vadd.f32 1.0, %v977_v21  ;;  %988 = vrcp.f32 %v734_v59 }
 0x73b   :  { %784 = vrot.lane.b32.xlu0 %v971_v57, %s1244_s23  ;;  %v981_v63 = vpop.eup %980  ;;  %990 = vrcp.f32 %v735_v60 }
 0x73c   :  { %v983_v0 = vpop.eup %982  ;;  %992 = vrcp.f32 %v733_v62 }
 0x73d   :  { %v985_v1 = vpop.eup %984 }
 0x73e   :  { %v987_v2 = vpop.eup %986  ;;  %v737_v3 = vadd.f32 1.0, %v985_v1 }
 0x73f   :  { %v736_v6 = vadd.f32 1.0, %v987_v2 }
 0x740   :  { %v989_v4 = vpop.eup %988  ;;  %994 = vrcp.f32 %v737_v3 }
 0x741   :  { %792 = vrot.lane.b32.xlu1 %v979_v61, %s1244_s23  ;;  %v991_v7 = vpop.eup %990  ;;  %996 = vrcp.f32 %v736_v6 }
 0x742   :  { %794 = vrot.lane.b32.xlu2 %v981_v63, %s1244_s23  ;;  %v993_v8 = vpop.eup %992 }
 0x743   :  { %790 = vrot.lane.b32.xlu0 %v983_v0, %s1244_s23 }
 0x746   :  { %v995_v5 = vpop.eup %994 }
 0x747   :  { %v997_v9 = vpop.eup %996 }
 0x749   :  { %798 = vrot.lane.b32.xlu1 %v989_v4, %s1244_s23 }
 0x74a   :  { %800 = vrot.lane.b32.xlu2 %v991_v7, %s1244_s23 }
 0x74b   :  { %796 = vrot.lane.b32.xlu0 %v993_v8, %s1244_s23 }
 0x751   :  { %804 = vrot.lane.b32.xlu1 %v995_v5, %s1244_s23 }
 0x753   :  { %802 = vrot.lane.b32.xlu0 %v997_v9, %s1244_s23 }
 0x784   :  { %v777_v10 = vpop.permute.xlu2 %776 }
 0x785   :  { %825 = vst.msk [vmem:[%s1572_s11 + $0x10] sm:$0xff] %vm174_vm1, %v777_v10 }
 0x78c   :  { %v783_v11 = vpop.permute.xlu2 %782 }
 0x78d   :  { %828 = vst.msk [vmem:[%s1572_s11 + $0x28] sm:$0xff] %vm174_vm1, %v783_v11 }
 0x794   :  { %v789_v12 = vpop.permute.xlu2 %788 }
 0x795   :  { %831 = vst.msk [vmem:[%s1572_s11 + $0x40] sm:$0xff] %vm174_vm1, %v789_v12 }
 0x79b   :  { %v781_v13 = vpop.permute.xlu1 %780 }
 0x79c   :  { %827 = vst.msk [vmem:[%s1572_s11 + $0x20] sm:$0xff] %vm174_vm1, %v781_v13  ;;  %v795_v14 = vpop.permute.xlu2 %794 }
 0x79d   :  { %834 = vst.msk [vmem:[%s1572_s11 + $0x58] sm:$0xff] %vm174_vm1, %v795_v14  ;;  %v773_v15 = vpop.permute.xlu0 %772 }
 0x79e   :  { %823 = vst.msk [vmem:[%s1572_s11] sm:$0xff] %vm174_vm1, %v773_v15 }
 0x7a3   :  { %v775_v16 = vpop.permute.xlu1 %774 }
 0x7a4   :  { %v801_v17 = vpop.permute.xlu2 %800  ;;  %824 = vst.msk [vmem:[%s1572_s11 + $0x8] sm:$0xff] %vm174_vm1, %v775_v16 }
 0x7a5   :  { %837 = vst.msk [vmem:[%s1572_s11 + $0x70] sm:$0xff] %vm174_vm1, %v801_v17  ;;  %v779_v19 = vpop.permute.xlu0 %778 }
 0x7a6   :  { %826 = vst.msk [vmem:[%s1572_s11 + $0x18] sm:$0xff] %vm174_vm1, %v779_v19 }
 0x7ab   :  { %v787_v20 = vpop.permute.xlu1 %786 }
 0x7ac   :  { %830 = vst.msk [vmem:[%s1572_s11 + $0x38] sm:$0xff] %vm174_vm1, %v787_v20 }
 0x7ad   :  { %v785_v22 = vpop.permute.xlu0 %784 }
 0x7ae   :  { %829 = vst.msk [vmem:[%s1572_s11 + $0x30] sm:$0xff] %vm174_vm1, %v785_v22 }
 0x7b3   :  { %v793_v23 = vpop.permute.xlu1 %792 }
 0x7b4   :  { %833 = vst.msk [vmem:[%s1572_s11 + $0x50] sm:$0xff] %vm174_vm1, %v793_v23 }
 0x7b5   :  { %v791_v24 = vpop.permute.xlu0 %790 }
 0x7b6   :  { %832 = vst.msk [vmem:[%s1572_s11 + $0x48] sm:$0xff] %vm174_vm1, %v791_v24 }
 0x7bb   :  { %v799_v25 = vpop.permute.xlu1 %798 }
 0x7bc   :  { %836 = vst.msk [vmem:[%s1572_s11 + $0x68] sm:$0xff] %vm174_vm1, %v799_v25 }
 0x7bd   :  { %v797_v26 = vpop.permute.xlu0 %796 }
 0x7be   :  { %835 = vst.msk [vmem:[%s1572_s11 + $0x60] sm:$0xff] %vm174_vm1, %v797_v26 }
 0x7c3   :  { %v805_v27 = vpop.permute.xlu1 %804 }
 0x7c4   :  { %839 = vst.msk [vmem:[%s1572_s11 + $0x80] sm:$0xff] %vm174_vm1, %v805_v27 }
 0x7c5   :  { %v803_v29 = vpop.permute.xlu0 %802 }
 0x7c6   :  { %838 = vst.msk [vmem:[%s1572_s11 + $0x78] sm:$0xff] %vm174_vm1, %v803_v29 }
 0x7c7   :  { %844 = vsyncpa [#allocation3], 1 }
 0x7c8   :  { %845 = vsyncpa [#allocation5], 1 }
 0x7c9   :  { %846 = vsyncpa [#allocation8], 1 }
 0x7ca   :  { %847 = vsyncpa [#allocation11], 1 }
 0x7cb   :  { %848 = vsyncpa [#allocation14], 1 }

</bundles_post_ra>
